<compile_context>
chip_gen: v7x
topology: tpu7x:2x2x1
jax: 0.10.0
libtpu: 0.0.40
codegen_flags: <defaults>
</compile_context>

<pallas_src>
import functools

import jax
import jax.numpy as jnp
from jax.experimental import pallas as pl
from jax.experimental.pallas import tpu as pltpu

_OUT_SUBLANES = 8
_OUT_LANES = 128
_VMEM_BUDGET_BYTES = 24 * 1024 * 1024   # target for double-buffered input tiles
_VMEM_LIMIT_BYTES = 48 * 1024 * 1024    # v7x-safe (64 MiB/TC) scoped limit


def _round_up(x, m):
    return (x + m - 1) // m * m


def _softplus(z):
    # -logsigmoid(x) == softplus(-x); exp/log1p hit the EUP slot and co-issue
    # with the VPU multiply / reduce work.
    return jnp.maximum(z, 0.0) + jnp.log1p(jnp.exp(-jnp.abs(z)))


def skipgram_tile_kernel(emb_u_ref, emb_v_ref, neg_ref, out_ref, *,
                         batch, b_tile, num_neg):
    i = pl.program_id(0)

    # Upcast right after the load: storage dtype may be bf16 (HBM compression)
    # but compute stays f32 so v5e (no bf16 VALU/EUP) lowers efficiently.
    emb_u = emb_u_ref[...].astype(jnp.float32)   # (b_tile, D)
    emb_v = emb_v_ref[...].astype(jnp.float32)   # (b_tile, D)

    # pos_score = -logsigmoid(<u, v>) == softplus(-<u, v>)
    pos = jnp.sum(emb_u * emb_v, axis=-1, keepdims=True)           # (b_tile, 1)
    per_row = _softplus(-pos)                                      # (b_tile, 1)

    # neg_score = sum_k softplus(<neg_k, u>).  The negatives block is
    # (num_neg, b_tile, D): one dense (b_tile, D) slab per k, so each product
    # stays in vregs (VPU mul + XLU lane-reduce) with no K->8 sublane padding
    # and no (b_tile, K, D) VMEM temporary.
    for k in range(num_neg):                       # static, tiny trip count
        neg_k = neg_ref[k].astype(jnp.float32)                     # (b_tile, D)
        logits = jnp.sum(neg_k * emb_u, axis=-1, keepdims=True)    # (b_tile, 1)
        per_row = per_row + _softplus(logits)

    # Zero the index-padded rows past the true batch size so the host-side
    # mean is unbiased.
    row = i * b_tile + jax.lax.broadcasted_iota(jnp.int32, (b_tile, 1), 0)
    per_row = jnp.where(row < batch, per_row, 0.0)

    tile_sum = jnp.sum(per_row)
    # Lane-dense (8, 128) partial-sum block -> full, unmasked vector stores.
    out_ref[...] = jnp.full((_OUT_SUBLANES, _OUT_LANES), tile_sum,
                            dtype=jnp.float32)


def skipgram_forward(center_emb, context_emb, center_w, context_w, negative_ws,
                     *, b_tile=None, compress_dtype=jnp.bfloat16):
    """SkipGram forward: JAX-side embedding gathers + Pallas score/loss kernel.

    compress_dtype: storage dtype for the gathered slabs' HBM round-trip
      (in-kernel compute is always f32).  None keeps the table dtype.
    """
    B = center_w.shape[0]
    K = negative_ws.shape[1]
    D = center_emb.shape[1]

    store_dtype = (jnp.dtype(center_emb.dtype) if compress_dtype is None
                   else jnp.dtype(compress_dtype))
    itemsize = store_dtype.itemsize
    sub = 8 * max(1, 4 // itemsize)      # sublane multiple for packed dtypes

    if b_tile is None:
        # VMEM-budget-driven tile: 2 (double-buffer) * (K neg rows + u + v)
        # * lane-padded width * storage bytes, per batch row.
        d_pad = _round_up(D, 128)
        bytes_per_row = 2 * (K + 2) * d_pad * itemsize
        b_budget = max(sub, (_VMEM_BUDGET_BYTES // bytes_per_row) // sub * sub)
        b_budget = min(b_budget, 4096)
        # Aim for >= 2 grid steps so the "parallel" batch axis can shard
        # across both TensorCores on v7x (harmless on 1-TC chips).
        b_half = _round_up(max(1, -(-B // 2)), sub)
        b_tile = min(b_budget, b_half)
    b_tile = max(sub, _round_up(int(b_tile), sub))

    num_tiles = -(-B // b_tile)
    b_padded = num_tiles * b_tile

    # Pad the *indices* (cheap) so every block exactly tiles its array; the
    # padded rows are masked out of the loss inside the kernel.
    if b_padded != B:
        pad = b_padded - B
        center_w = jnp.pad(center_w, (0, pad))
        context_w = jnp.pad(context_w, (0, pad))
        negative_ws = jnp.pad(negative_ws, ((0, pad), (0, 0)))

    # TODO(synk): fuse these gathers into the kernel (scalar-prefetch indices +
    # per-row DMA from a memory_space=pl.ANY table) to avoid the HBM round-trip
    # of the gathered slabs entirely.
    emb_u = jnp.take(center_emb, center_w, axis=0).astype(store_dtype)    # (Bp, D)
    emb_v = jnp.take(context_emb, context_w, axis=0).astype(store_dtype)  # (Bp, D)
    # (K, Bp, D): batch on the sublane axis -> dense sublanes, no K padding.
    neg_s = jnp.take(context_emb, negative_ws.T, axis=0).astype(store_dtype)

    kernel = functools.partial(skipgram_tile_kernel,
                               batch=B, b_tile=b_tile, num_neg=K)

    partials = pl.pallas_call(
        kernel,
        out_shape=jax.ShapeDtypeStruct((num_tiles * _OUT_SUBLANES, _OUT_LANES),
                                       jnp.float32),
        grid=(num_tiles,),
        in_specs=[
            pl.BlockSpec((b_tile, D), lambda i: (i, 0)),
            pl.BlockSpec((b_tile, D), lambda i: (i, 0)),
            pl.BlockSpec((K, b_tile, D), lambda i: (0, i, 0)),
        ],
        out_specs=pl.BlockSpec((_OUT_SUBLANES, _OUT_LANES), lambda i: (i, 0)),
        compiler_params=pltpu.CompilerParams(
            dimension_semantics=("parallel",),
            vmem_limit_bytes=_VMEM_LIMIT_BYTES,
        ),
    )(emb_u, emb_v, neg_s)

    # Each (8, 128) block replicates its tile's partial sum; finish with a
    # contiguous reduce (no strided slice -> no XLA gather) and the mean.
    total = jnp.sum(partials) / (_OUT_SUBLANES * _OUT_LANES)
    return total / B


if __name__ == "__main__":
    vocab_size = 64
    emb_dim = 32
    batch = 20          # not a tile multiple -> exercises index padding + masking
    num_neg = 6

    key = jax.random.PRNGKey(0)
    k_center, k_context, k_cw, k_xw, k_neg = jax.random.split(key, 5)

    initrange = 1.0 / emb_dim
    center_emb = jax.random.uniform(
        k_center, (vocab_size, emb_dim), jnp.float32, -initrange, initrange)
    context_emb = jax.random.uniform(
        k_context, (vocab_size, emb_dim), jnp.float32, -initrange, initrange)

    center_w = jax.random.randint(k_cw, (batch,), 0, vocab_size, jnp.int32)
    context_w = jax.random.randint(k_xw, (batch,), 0, vocab_size, jnp.int32)
    negative_ws = jax.random.randint(
        k_neg, (batch, num_neg), 0, vocab_size, jnp.int32)

    # pure-JAX f32 reference
    emb_u = center_emb[center_w]
    emb_v = context_emb[context_w]
    neg_s = context_emb[negative_ws]
    pos = jnp.sum(emb_u * emb_v, axis=1)
    pos_score = -jax.nn.log_sigmoid(pos)
    neg_logits = jnp.einsum("bkd,bd->bk", neg_s, emb_u)
    neg_score = -jnp.sum(jax.nn.log_sigmoid(-neg_logits), axis=1)
    ref = jnp.mean(pos_score + neg_score)

    # Exact-math check with f32 storage.
    loss_f32 = skipgram_forward(center_emb, context_emb, center_w, context_w,
                                negative_ws, compress_dtype=None)
    loss_f32 = jax.block_until_ready(loss_f32)
    assert jnp.allclose(loss_f32, ref, rtol=1e-5, atol=1e-5), (loss_f32, ref)

    # Default path: bf16 HBM storage for the gathered slabs, f32 compute.
    loss = skipgram_forward(center_emb, context_emb, center_w, context_w,
                            negative_ws)
    loss = jax.block_until_ready(loss)
    assert jnp.allclose(loss, ref, rtol=1e-2, atol=1e-2), (loss, ref)

    print("KERNEL_OK")
</pallas_src>

<mosaic_0001>
module attributes {stable_mosaic.version = 11 : i64} {
  func.func @skipgram_tile_kernel(%arg0: i32, %arg1: memref<16x32xf32, #tpu.memory_space<vmem>>, %arg2: memref<16x32xf32, #tpu.memory_space<vmem>>, %arg3: memref<6x16x32xf32, #tpu.memory_space<vmem>>, %arg4: memref<8x128xf32, #tpu.memory_space<vmem>>) attributes {dimension_semantics = [#tpu.dimension_semantics<parallel>], iteration_bounds = array<i64: 2>, scalar_prefetch = 0 : i64, scratch_operands = 0 : i64, tpu.core_type = #tpu.core_type<tc>, window_params = [{transform_indices = @transform_0, window_bounds = array<i64: 16, 32>}, {transform_indices = @transform_1, window_bounds = array<i64: 16, 32>}, {transform_indices = @transform_2, window_bounds = array<i64: 6, 16, 32>}, {transform_indices = @transform_3, window_bounds = array<i64: 8, 128>}]} {
    %c0 = arith.constant 0 : index
    %c0_0 = arith.constant 0 : index
    %0 = vector.load %arg1[%c0, %c0_0] : memref<16x32xf32, #tpu.memory_space<vmem>>, vector<16x32xf32>
    %c0_1 = arith.constant 0 : index
    %c0_2 = arith.constant 0 : index
    %1 = vector.load %arg2[%c0_1, %c0_2] : memref<16x32xf32, #tpu.memory_space<vmem>>, vector<16x32xf32>
    %2 = arith.mulf %0, %1 : vector<16x32xf32>
    %cst = arith.constant dense<0.000000e+00> : vector<16xf32>
    %3 = vector.multi_reduction <add>, %2, %cst [1] : vector<16x32xf32> to vector<16xf32>
    %4 = vector.shape_cast %3 : vector<16xf32> to vector<16x1xf32>
    %cst_3 = arith.constant 0.000000e+00 : f32
    %5 = vector.broadcast %cst_3 : f32 to vector<16x1xf32>
    %6 = arith.subf %5, %4 : vector<16x1xf32>
    %cst_4 = arith.constant 0.000000e+00 : f32
    %7 = vector.broadcast %cst_4 : f32 to vector<16x1xf32>
    %8 = arith.maximumf %6, %7 : vector<16x1xf32>
    %9 = math.absf %6 : vector<16x1xf32>
    %cst_5 = arith.constant 0.000000e+00 : f32
    %10 = vector.broadcast %cst_5 : f32 to vector<16x1xf32>
    %11 = arith.subf %10, %9 : vector<16x1xf32>
    %12 = math.exp %11 : vector<16x1xf32>
    %13 = math.log1p %12 : vector<16x1xf32>
    %14 = arith.addf %8, %13 : vector<16x1xf32>
    %c0_6 = arith.constant 0 : index
    %c0_7 = arith.constant 0 : index
    %c0_8 = arith.constant 0 : index
    %15 = vector.load %arg3[%c0_6, %c0_7, %c0_8] : memref<6x16x32xf32, #tpu.memory_space<vmem>>, vector<1x16x32xf32>
    %16 = vector.shape_cast %15 : vector<1x16x32xf32> to vector<16x32xf32>
    %17 = arith.mulf %16, %0 : vector<16x32xf32>
    %cst_9 = arith.constant dense<0.000000e+00> : vector<16xf32>
    %18 = vector.multi_reduction <add>, %17, %cst_9 [1] : vector<16x32xf32> to vector<16xf32>
    %19 = vector.shape_cast %18 : vector<16xf32> to vector<16x1xf32>
    %cst_10 = arith.constant 0.000000e+00 : f32
    %20 = vector.broadcast %cst_10 : f32 to vector<16x1xf32>
    %21 = arith.maximumf %19, %20 : vector<16x1xf32>
    %22 = math.absf %19 : vector<16x1xf32>
    %cst_11 = arith.constant 0.000000e+00 : f32
    %23 = vector.broadcast %cst_11 : f32 to vector<16x1xf32>
    %24 = arith.subf %23, %22 : vector<16x1xf32>
    %25 = math.exp %24 : vector<16x1xf32>
    %26 = math.log1p %25 : vector<16x1xf32>
    %27 = arith.addf %21, %26 : vector<16x1xf32>
    %28 = arith.addf %14, %27 : vector<16x1xf32>
    %c1 = arith.constant 1 : index
    %c0_12 = arith.constant 0 : index
    %c0_13 = arith.constant 0 : index
    %29 = vector.load %arg3[%c1, %c0_12, %c0_13] : memref<6x16x32xf32, #tpu.memory_space<vmem>>, vector<1x16x32xf32>
    %30 = vector.shape_cast %29 : vector<1x16x32xf32> to vector<16x32xf32>
    %31 = arith.mulf %30, %0 : vector<16x32xf32>
    %cst_14 = arith.constant dense<0.000000e+00> : vector<16xf32>
    %32 = vector.multi_reduction <add>, %31, %cst_14 [1] : vector<16x32xf32> to vector<16xf32>
    %33 = vector.shape_cast %32 : vector<16xf32> to vector<16x1xf32>
    %cst_15 = arith.constant 0.000000e+00 : f32
    %34 = vector.broadcast %cst_15 : f32 to vector<16x1xf32>
    %35 = arith.maximumf %33, %34 : vector<16x1xf32>
    %36 = math.absf %33 : vector<16x1xf32>
    %cst_16 = arith.constant 0.000000e+00 : f32
    %37 = vector.broadcast %cst_16 : f32 to vector<16x1xf32>
    %38 = arith.subf %37, %36 : vector<16x1xf32>
    %39 = math.exp %38 : vector<16x1xf32>
    %40 = math.log1p %39 : vector<16x1xf32>
    %41 = arith.addf %35, %40 : vector<16x1xf32>
    %42 = arith.addf %28, %41 : vector<16x1xf32>
    %c2 = arith.constant 2 : index
    %c0_17 = arith.constant 0 : index
    %c0_18 = arith.constant 0 : index
    %43 = vector.load %arg3[%c2, %c0_17, %c0_18] : memref<6x16x32xf32, #tpu.memory_space<vmem>>, vector<1x16x32xf32>
    %44 = vector.shape_cast %43 : vector<1x16x32xf32> to vector<16x32xf32>
    %45 = arith.mulf %44, %0 : vector<16x32xf32>
    %cst_19 = arith.constant dense<0.000000e+00> : vector<16xf32>
    %46 = vector.multi_reduction <add>, %45, %cst_19 [1] : vector<16x32xf32> to vector<16xf32>
    %47 = vector.shape_cast %46 : vector<16xf32> to vector<16x1xf32>
    %cst_20 = arith.constant 0.000000e+00 : f32
    %48 = vector.broadcast %cst_20 : f32 to vector<16x1xf32>
    %49 = arith.maximumf %47, %48 : vector<16x1xf32>
    %50 = math.absf %47 : vector<16x1xf32>
    %cst_21 = arith.constant 0.000000e+00 : f32
    %51 = vector.broadcast %cst_21 : f32 to vector<16x1xf32>
    %52 = arith.subf %51, %50 : vector<16x1xf32>
    %53 = math.exp %52 : vector<16x1xf32>
    %54 = math.log1p %53 : vector<16x1xf32>
    %55 = arith.addf %49, %54 : vector<16x1xf32>
    %56 = arith.addf %42, %55 : vector<16x1xf32>
    %c3 = arith.constant 3 : index
    %c0_22 = arith.constant 0 : index
    %c0_23 = arith.constant 0 : index
    %57 = vector.load %arg3[%c3, %c0_22, %c0_23] : memref<6x16x32xf32, #tpu.memory_space<vmem>>, vector<1x16x32xf32>
    %58 = vector.shape_cast %57 : vector<1x16x32xf32> to vector<16x32xf32>
    %59 = arith.mulf %58, %0 : vector<16x32xf32>
    %cst_24 = arith.constant dense<0.000000e+00> : vector<16xf32>
    %60 = vector.multi_reduction <add>, %59, %cst_24 [1] : vector<16x32xf32> to vector<16xf32>
    %61 = vector.shape_cast %60 : vector<16xf32> to vector<16x1xf32>
    %cst_25 = arith.constant 0.000000e+00 : f32
    %62 = vector.broadcast %cst_25 : f32 to vector<16x1xf32>
    %63 = arith.maximumf %61, %62 : vector<16x1xf32>
    %64 = math.absf %61 : vector<16x1xf32>
    %cst_26 = arith.constant 0.000000e+00 : f32
    %65 = vector.broadcast %cst_26 : f32 to vector<16x1xf32>
    %66 = arith.subf %65, %64 : vector<16x1xf32>
    %67 = math.exp %66 : vector<16x1xf32>
    %68 = math.log1p %67 : vector<16x1xf32>
    %69 = arith.addf %63, %68 : vector<16x1xf32>
    %70 = arith.addf %56, %69 : vector<16x1xf32>
    %c4 = arith.constant 4 : index
    %c0_27 = arith.constant 0 : index
    %c0_28 = arith.constant 0 : index
    %71 = vector.load %arg3[%c4, %c0_27, %c0_28] : memref<6x16x32xf32, #tpu.memory_space<vmem>>, vector<1x16x32xf32>
    %72 = vector.shape_cast %71 : vector<1x16x32xf32> to vector<16x32xf32>
    %73 = arith.mulf %72, %0 : vector<16x32xf32>
    %cst_29 = arith.constant dense<0.000000e+00> : vector<16xf32>
    %74 = vector.multi_reduction <add>, %73, %cst_29 [1] : vector<16x32xf32> to vector<16xf32>
    %75 = vector.shape_cast %74 : vector<16xf32> to vector<16x1xf32>
    %cst_30 = arith.constant 0.000000e+00 : f32
    %76 = vector.broadcast %cst_30 : f32 to vector<16x1xf32>
    %77 = arith.maximumf %75, %76 : vector<16x1xf32>
    %78 = math.absf %75 : vector<16x1xf32>
    %cst_31 = arith.constant 0.000000e+00 : f32
    %79 = vector.broadcast %cst_31 : f32 to vector<16x1xf32>
    %80 = arith.subf %79, %78 : vector<16x1xf32>
    %81 = math.exp %80 : vector<16x1xf32>
    %82 = math.log1p %81 : vector<16x1xf32>
    %83 = arith.addf %77, %82 : vector<16x1xf32>
    %84 = arith.addf %70, %83 : vector<16x1xf32>
    %c5 = arith.constant 5 : index
    %c0_32 = arith.constant 0 : index
    %c0_33 = arith.constant 0 : index
    %85 = vector.load %arg3[%c5, %c0_32, %c0_33] : memref<6x16x32xf32, #tpu.memory_space<vmem>>, vector<1x16x32xf32>
    %86 = vector.shape_cast %85 : vector<1x16x32xf32> to vector<16x32xf32>
    %87 = arith.mulf %86, %0 : vector<16x32xf32>
    %cst_34 = arith.constant dense<0.000000e+00> : vector<16xf32>
    %88 = vector.multi_reduction <add>, %87, %cst_34 [1] : vector<16x32xf32> to vector<16xf32>
    %89 = vector.shape_cast %88 : vector<16xf32> to vector<16x1xf32>
    %cst_35 = arith.constant 0.000000e+00 : f32
    %90 = vector.broadcast %cst_35 : f32 to vector<16x1xf32>
    %91 = arith.maximumf %89, %90 : vector<16x1xf32>
    %92 = math.absf %89 : vector<16x1xf32>
    %cst_36 = arith.constant 0.000000e+00 : f32
    %93 = vector.broadcast %cst_36 : f32 to vector<16x1xf32>
    %94 = arith.subf %93, %92 : vector<16x1xf32>
    %95 = math.exp %94 : vector<16x1xf32>
    %96 = math.log1p %95 : vector<16x1xf32>
    %97 = arith.addf %91, %96 : vector<16x1xf32>
    %98 = arith.addf %84, %97 : vector<16x1xf32>
    %c16_i32 = arith.constant 16 : i32
    %99 = arith.muli %arg0, %c16_i32 : i32
    %100 = tpu.iota {dimensions = array<i32: 0>} : vector<16x1xi32>
    %101 = vector.broadcast %99 : i32 to vector<16x1xi32>
    %102 = arith.addi %101, %100 : vector<16x1xi32>
    %c20_i32 = arith.constant 20 : i32
    %103 = vector.broadcast %c20_i32 : i32 to vector<16x1xi32>
    %104 = arith.cmpi slt, %102, %103 : vector<16x1xi32>
    %cst_37 = arith.constant 0.000000e+00 : f32
    %105 = vector.broadcast %cst_37 : f32 to vector<16x1xf32>
    %106 = arith.select %104, %98, %105 : vector<16x1xi1>, vector<16x1xf32>
    %107 = vector.shape_cast %106 : vector<16x1xf32> to vector<1x16x1xf32>
    %cst_38 = arith.constant dense<0.000000e+00> : vector<1xf32>
    %108 = vector.multi_reduction <add>, %107, %cst_38 [1, 2] : vector<1x16x1xf32> to vector<1xf32>
    %109 = vector.shape_cast %108 : vector<1xf32> to vector<1x1x1xf32>
    %110 = vector.extract %109[0, 0, 0] : f32 from vector<1x1x1xf32>
    %111 = vector.broadcast %110 : f32 to vector<8x128xf32>
    %c0_39 = arith.constant 0 : index
    %c0_40 = arith.constant 0 : index
    %112 = vector.load %arg4[%c0_39, %c0_40] : memref<8x128xf32, #tpu.memory_space<vmem>>, vector<8x128xf32>
    tpu.vector_store %arg4[%c0_39, %c0_40], %111 {strides = array<i32>} : memref<8x128xf32, #tpu.memory_space<vmem>>, vector<8x128xf32>,
    return
  }
  func.func @transform_0(%arg0: i32) -> (i32, i32) {
    %c0_i32 = arith.constant 0 : i32
    %c0_i32_0 = arith.constant 0 : i32
    return %arg0, %c0_i32 : i32, i32
  }
  func.func @transform_1(%arg0: i32) -> (i32, i32) {
    %c0_i32 = arith.constant 0 : i32
    %c0_i32_0 = arith.constant 0 : i32
    return %arg0, %c0_i32 : i32, i32
  }
  func.func @transform_2(%arg0: i32) -> (i32, i32, i32) {
    %c0_i32 = arith.constant 0 : i32
    %c0_i32_0 = arith.constant 0 : i32
    %c0_i32_1 = arith.constant 0 : i32
    return %c0_i32, %arg0, %c0_i32_0 : i32, i32, i32
  }
  func.func @transform_3(%arg0: i32) -> (i32, i32) {
    %c0_i32 = arith.constant 0 : i32
    %c0_i32_0 = arith.constant 0 : i32
    return %arg0, %c0_i32 : i32, i32
  }
}

</mosaic_0001>

<bundles_post_ra>
// kernel: tpu_custom_call.1
= control target key start
LH: loop header
LB: loop body
LE: loop exit
PB: predicated region body
PF: predicated region fallthrough
CT: control target
= control target key end

     0   :  { %8 = vsyncpa [#allocation3], 0  ;;  %s1561_s0 = inlined_call_operand.hbm [shape: f32[32,32], index: 0, kind: input, shape index: {}]   ;;  %s1562_s1 = inlined_call_operand.hbm [shape: f32[32,32], index: 1, kind: input, shape index: {}]   ;;  %s1563_s2 = inlined_call_operand.hbm [shape: f32[6,32,32], index: 2, kind: input, shape index: {}]   ;;  %s1564_s3 = inlined_call_operand.hbm [shape: f32[16,128], index: 3, kind: output, shape index: {}]  }
   0x1   :  { %10 = vsyncpa [#allocation3 + $0x1], 0 }
   0x2   :  { %11 = vsyncpa [#allocation6], 0 }
   0x3   :  { %13 = vsyncpa [#allocation6 + $0x1], 0 }
   0x4   :  { %14 = vsyncpa [#allocation4], 0 }
   0x5   :  { %16 = vsyncpa [#allocation4 + $0x1], 0  ;;  %s1063_s12 = smov 0   ;;  %s1065_s13 = smov 0  }
   0x6   :  { %s1067_s14 = smov 0   ;;  %s1069_s15 = smov 0  }
   0x7 LB: > { %s1084_s16 = sadd.s32 4294967295, %s1030_s15   ;;  %s749_s17 = sadd.s32 4294967294, %s1030_s15   ;;  %s1030_s15 = sphi %s1069_s15, %s1597_s15   ;;  %s1026_s14 = sphi %s1067_s14, %s1596_s14   ;;  %s1022_s13 = sphi %s1065_s13, %s1595_s13   ;;  %s1018_s12 = sphi %s1063_s12, %s1594_s12  }
   0x8   : > { %s1088_s18 = sadd.s32 1, %s1030_s15   ;;  %s29_s19 = sadd.s32 1, %s1026_s14 }
   0x9   : > { %s26_s20 = ssub.s32 %s1030_s15, %s1088_s18  ;;  %p36_p0 = scmp.ne.s32.totalorder %s1026_s14, %s1022_s13 }
   0xa   : > { %p27_p1 = scmp.eq.s32.totalorder %s26_s20, 0  ;;  %p37_p2 = scmp.eq.s32.totalorder %s1030_s15, 0 }
   0xb   : > { %p42_p3 = scmp.ne.s32.totalorder %s1022_s13, %s1018_s12  ;;  %p43_p4 = scmp.eq.s32.totalorder %s1084_s16, 0 }
   0xc   : > { %s1100_s21 = scalar_select %p27_p1, %s1026_s14, %s29_s19  }
   0xd   : > { %p1102_p5 = por %p37_p2, %p36_p0  ;;  %p1106_p6 = por %p43_p4, %p42_p3 }
   0xe   : > { %p118_p7 = scmp.eq.s32.totalorder %s1084_s16, 1  ;;  %p124_p8 = scmp.eq.s32.totalorder %s749_s17, 1 }
   0xf   : > { %p1565_p11 = scmp.ge.s32.totalorder %s1030_s15, 2 }
  0x10   : > { %p1111_p9 = por %p118_p7, %p36_p0  ;;  %p1115_p10 = por %p124_p8, %p42_p3 }
  0x11   : > { %140 = sbr.rel (%p1565_p11) target bundleno = 82 (0x52), region = 16  ;;  %s1123_s26 = sand.u32 (!%p1565_p11), 1, %s1026_s14  }
  0x12   : > { %s1569_s24 = scalar_select %p1111_p9, 1, 0 }
  0x13   : > { %s1570_s25 = scalar_select %p1115_p10, 1, 0 }
  0x14   : > { %s1126_s27 = sshll.u32 (!%p1565_p11), %s1030_s15, 8  ;;  %s752_s28 = sshll.u32 (!%p1565_p11), %s1123_s26, 4 }
  0x15   : > { %s1133_s4 = scalar_lea.hbm (!%p1565_p11), %s1561_s0, %s1126_s27  ;;  %s148_s5 = scalar_lea.vmem (!%p1565_p11), [#allocation2], %s752_s28 }
  0x16   : > { %s155_s6 = sshll.u32 (!%p1565_p11), %s148_s5, 4  ;;  %s145_s7 = scalar_lea.sflag (!%p1565_p11), [#allocation3], %s1123_s26  ;;  %s1137_s6 = int_to_ptr.vmem [resolvable:$true] %s155_s6 }
  0x17   : > { %s904_s8 = scalar_lea.hbm (!%p1565_p11), %s1133_s4, 256  ;;  %s908_s11 = scalar_lea.hbm (!%p1565_p11), %s1561_s0, 512 }
  0x18   : > { %p905_p12 = scmp.ne.s32.totalorder %s1133_s4, %s904_s8  ;;  %p909_p1 = scmp.lt.u32.totalorder %s1133_s4, %s1561_s0 }
  0x19   : > { %p910_p2 = scmp.lt.u32.totalorder %s908_s11, %s904_s8  ;;  %p912_p4 = scmp.lt.u32.totalorder %s904_s8, %s1133_s4 }
  0x1a   : > { %p906_p13 = pnand %p905_p12, %p1102_p5 }
  0x1b   : > { %p911_p3 = por %p910_p2, %p909_p1 }
  0x1c   : > { %p907_p0 = pneg %p906_p13 }
  0x1d   : > { %p913_p7 = por %p912_p4, %p911_p3 }
  0x1f   : > { %p914_p8 = pnand %p913_p7, %p907_p0 }
  0x21   : > { %917 = shalt.err (!%p914_p8)
}
  0x22   : > { %s918_s20 = scalar_lea.vmem %s1137_s6, 256  ;;  %s1032_s29 = smov [#allocation2]  }
  0x23   : > { %p919_p12 = scmp.ne.s32.totalorder %s1137_s6, %s918_s20  ;;  %s922_s30 = sshll.u32 %s1032_s29, 4  ;;  %s923_s30 = int_to_ptr.vmem [resolvable:$false] %s922_s30 }
  0x24   : > { %s924_s5 = scalar_lea.vmem %s923_s30, 512  ;;  %p925_p10 = scmp.lt.s32.totalorder %s1137_s6, %s923_s30 }
  0x25   : > { %p920_p13 = pnand %p919_p12, %p1102_p5  ;;  %p926_p9 = scmp.lt.s32.totalorder %s924_s5, %s918_s20 }
  0x27   : > { %p921_p11 = pneg %p920_p13  ;;  %p927_p1 = por %p926_p9, %p925_p10 }
  0x29   : > { %p928_p2 = pnand %p927_p1, %p921_p11 }
  0x2b   : > { %931 = shalt.err (!%p928_p2)
}
  0x2c   : > { %s1033_s8 = smov 128   ;;  %s1034_s9 = smov 8  }
  0x2d   : > { %788 = dma.hbm_to_vmem [thread:$0]  (%p1102_p5), %s1133_s4, 256, %s1137_s6, %s145_s7, %s1033_s8, %s1033_s8, %s1034_s9  }
  0x2e   : > { %s165_s10 = sand.u32 1, %s1030_s15   ;;  %s1171_s19 = scalar_lea.hbm %s1562_s1, %s1126_s27 }
  0x2f   : > { %s169_s20 = scalar_lea.vmem [#allocation5], %s752_s28  ;;  %s1177_s30 = scalar_lea.sflag [#allocation6], %s165_s10 }
  0x30   : > { %s176_s29 = sshll.u32 %s169_s20, 4  ;;  %s932_s5 = scalar_lea.hbm %s1171_s19, 256  ;;  %s1175_s29 = int_to_ptr.vmem [resolvable:$true] %s176_s29 }
  0x31   : > { %p933_p9 = scmp.ne.s32.totalorder %s1171_s19, %s932_s5  ;;  %s936_s7 = scalar_lea.hbm %s1562_s1, 512 }
  0x32   : > { %p937_p0 = scmp.lt.u32.totalorder %s1171_s19, %s1562_s1  ;;  %p938_p3 = scmp.lt.u32.totalorder %s936_s7, %s932_s5 }
  0x33   : > { %p934_p10 = pnand %p933_p9, %p1102_p5  ;;  %p940_p7 = scmp.lt.u32.totalorder %s932_s5, %s1171_s19 }
  0x34   : > { %p939_p4 = por %p938_p3, %p937_p0 }
  0x35   : > { %p935_p11 = pneg %p934_p10 }
  0x36   : > { %p941_p8 = por %p940_p7, %p939_p4 }
  0x38   : > { %p942_p12 = pnand %p941_p8, %p935_p11 }
  0x3a   : > { %945 = shalt.err (!%p942_p12)
}
  0x3b   : > { %s946_s28 = scalar_lea.vmem %s1175_s29, 256  ;;  %s1035_s10 = smov [#allocation5]  }
  0x3c   : > { %p947_p13 = scmp.ne.s32.totalorder %s1175_s29, %s946_s28  ;;  %s950_s20 = sshll.u32 %s1035_s10, 4  ;;  %s951_s20 = int_to_ptr.vmem [resolvable:$false] %s950_s20 }
  0x3d   : > { %s952_s4 = scalar_lea.vmem %s951_s20, 512  ;;  %p953_p9 = scmp.lt.s32.totalorder %s1175_s29, %s951_s20 }
  0x3e   : > { %p948_p1 = pnand %p947_p13, %p1102_p5  ;;  %p954_p10 = scmp.lt.s32.totalorder %s952_s4, %s946_s28 }
  0x40   : > { %p949_p2 = pneg %p948_p1  ;;  %p955_p0 = por %p954_p10, %p953_p9 }
  0x42   : > { %p956_p3 = pnand %p955_p0, %p949_p2 }
  0x44   : > { %959 = shalt.err (!%p956_p3)
}
  0x45   : > { %789 = dma.hbm_to_vmem [thread:$0]  (%p1102_p5), %s1171_s19, 256, %s1175_s29, %s1177_s30, %s1033_s8, %s1033_s8, %s1034_s9  }
  0x46   : > { %s784_s5 = smul.u32 96, %s1123_s26  ;;  %s196_s11 = scalar_lea.hbm %s1563_s2, %s1126_s27 }
  0x47   : > { %s790_s17 = scalar_select %p1102_p5, [#allocation0], [#allocation11] }
  0x48   : > { %s190_s10 = scalar_lea.vmem [#allocation7], %s784_s5  ;;  %s1036_s8 = smov 512  }
  0x49   : > { %s201_s28 = sld [smem:[%s790_s17]]   ;;  %s209_s20 = sshll.u32 %s190_s10, 4  ;;  %s210_s20 = int_to_ptr.vmem [resolvable:$true] %s209_s20 }
  0x4a   : > { %791 = sst [smem:[#allocation10]] (%p1102_p5), %s1036_s8  ;;  %s1037_s9 = smov 256  }
  0x4b   : > { %792 = sst [smem:[#allocation10 + $0x1]] (%p1102_p5), %s1037_s9  ;;  %s1038_s26 = smov 2  }
  0x4c   : > { %793 = sst [smem:[#allocation10 + $0x2]] (%p1102_p5), %s1038_s26  ;;  %s1039_s19 = smov 128  }
  0x4d   : > { %794 = sst [smem:[#allocation10 + $0x3]] (%p1102_p5), %s1039_s19  ;;  %s1040_s4 = smov 8  }
  0x4e   : > { %795 = sst [smem:[#allocation10 + $0x4]] (%p1102_p5), %s1039_s19  ;;  %s1041_s5 = smov [#allocation9]  }
  0x4f   : > { %s760_s27 = sshll.u32 %s201_s28, 26  ;;  %796 = sst [smem:[#allocation10 + $0x5]] (%p1102_p5), %s1040_s4 }
  0x50   : > { %s761_s29 = sadd.s32 134217728, %s760_s27 }
  0x51   : > { %797 = dma.general (%p1102_p5), %s196_s11, 1536, %s210_s20, %s1177_s30, %s1041_s5, [#allocation10], %s761_s29, 0  }
  0x52 PF: > { %p762_p11 = scmp.ge.s32.totalorder %s1030_s15, 1  ;;  %p230_p4 = scmp.lt.s32.totalorder %s1030_s15, 3 }
  0x54   : > { %p231_p7 = pnand %p762_p11, %p230_p4 }
  0x55   : > { %s1229_s6 = sand.u32 (!%p231_p7), 1, %s1022_s13  }
  0x56   : > { %234 = sbr.rel (%p231_p7) target bundleno = 539 (0x21b), region = 32  ;;  %s763_s7 = sshll.u32 (!%p231_p7), %s1229_s6, 4 }
  0x57   : > { %s237_s17 = scalar_lea.sflag (!%p231_p7), [#allocation3], %s1229_s6  ;;  %s240_s28 = scalar_lea.vmem (!%p231_p7), [#allocation2], %s763_s7 }
  0x5d   : > { %1005 = dma.done.wait (%p1106_p6), %s237_s17, 256  }
  0x5e   : > { %1007 = vsyncadd (%p1106_p6), %s237_s17, 4294967040  ;;  %s245_s22 = sand.u32 1, %s1084_s16   ;;  %s249_s11 = scalar_lea.vmem [#allocation5], %s763_s7 }
  0x5f   : > { %s246_s30 = scalar_lea.sflag [#allocation6], %s245_s22 }
  0x60   : > { %1009 = dma.done.wait (%p1106_p6), %s246_s30, 1792  }
  0x61   : > { %1011 = vsyncadd (%p1106_p6), %s246_s30, 4294965504  ;;  %s785_s10 = smul.u32 96, %s1229_s6  ;;  %v294_v0 = vld [vmem:[%s240_s28] sm:$0xff]  ;;  %vm300_vm0 = vcmask 261120   ;;  %v295_v5 = vld [vmem:[%s240_s28 + $0x8] sm:$0xff]  ;;  %s776_s23 = sshll.u32 %s1084_s16, 4 }
  0x62   : > { %v296_v2 = vld [vmem:[%s249_s11] sm:$0xff]  ;;  %v297_v7 = vld [vmem:[%s249_s11 + $0x8] sm:$0xff]  ;;  %s765_s8 = sshll.u32 %s1229_s6, 3  ;;  %s778_s19 = sshll.u32 %s1084_s16, 7 }
  0x63   : > { %s1243_s20 = scalar_lea.vmem [#allocation7], %s785_s10  ;;  %v298_v4 = vmul.f32 %v296_v2, %v294_v0  ;;  %v299_v9 = vmul.f32 %v297_v7, %v295_v5  ;;  %s290_s9 = scalar_lea.vmem [#allocation8], %s765_s8 }
  0x64   : > { %v339_v1 = vld [vmem:[%s1243_s20] sm:$0xff]  ;;  %v340_v6 = vld [vmem:[%s1243_s20 + $0x8] sm:$0xff]  ;;  %v767_v10 = vld [vmem:[%s1243_s20 + $0x18] sm:$0xff]  ;;  %s636_s26 = sshll.u32 %s290_s9, 4  ;;  %s1519_s5 = scalar_lea.hbm %s1564_s3, %s778_s19  ;;  %s1514_s26 = int_to_ptr.vmem [resolvable:$true] %s636_s26 }
  0x65   : > { %v341_v3 = vmul.f32 %v339_v1, %v294_v0  ;;  %v342_v8 = vmul.f32 %v340_v6, %v295_v5  ;;  %v766_v11 = vld [vmem:[%s1243_s20 + $0x10] sm:$0xff]  ;;  %v301_v13 = vsel %vm300_vm0, %v298_v4, 0.0  ;;  %v304_v15 = vsel %vm300_vm0, %v299_v9, 0.0  ;;  %v769_v18 = vld [vmem:[%s1243_s20 + $0x28] sm:$0xff]  ;;  %v768_v19 = vld [vmem:[%s1243_s20 + $0x20] sm:$0xff]  ;;  %s623_s7 = scalar_lea.sflag [#allocation4], %s1229_s6 }
  0x66   : > { %302 = vadd.xlane.f32.xlu0 %v301_v13  ;;  %v385_v16 = vmul.f32 %v767_v10, %v295_v5  ;;  %v384_v17 = vmul.f32 %v766_v11, %v294_v0  ;;  %v428_v22 = vmul.f32 %v769_v18, %v295_v5  ;;  %v427_v23 = vmul.f32 %v768_v19, %v294_v0  ;;  %v771_v24 = vld [vmem:[%s1243_s20 + $0x38] sm:$0xff]  ;;  %v770_v25 = vld [vmem:[%s1243_s20 + $0x30] sm:$0xff]  ;;  %v773_v30 = vld [vmem:[%s1243_s20 + $0x48] sm:$0xff]  ;;  %s960_s17 = scalar_lea.vmem %s1514_s26, 128  ;;  %p1591_p6 = scmp.ne.s32.totalorder %s1569_s24, 0 }
  0x67   : > { %v343_v12 = vsel %vm300_vm0, %v341_v3, 0.0  ;;  %v346_v14 = vsel %vm300_vm0, %v342_v8, 0.0  ;;  %v471_v28 = vmul.f32 %v771_v24, %v295_v5  ;;  %v470_v29 = vmul.f32 %v770_v25, %v294_v0  ;;  %v772_v31 = vld [vmem:[%s1243_s20 + $0x40] sm:$0xff]  ;;  %v775_v36 = vld [vmem:[%s1243_s20 + $0x58] sm:$0xff]  ;;  %v774_v37 = vld [vmem:[%s1243_s20 + $0x50] sm:$0xff]  ;;  %p961_p5 = scmp.ne.s32.totalorder %s1514_s26, %s960_s17  ;;  %s1042_s16 = smov [#allocation8]  }
  0x68   : > { %344 = vadd.xlane.f32.xlu1 %v343_v12  ;;  %v389_v20 = vsel %vm300_vm0, %v385_v16, 0.0  ;;  %v386_v21 = vsel %vm300_vm0, %v384_v17, 0.0  ;;  %v432_v26 = vsel %vm300_vm0, %v428_v22, 0.0  ;;  %v429_v27 = vsel %vm300_vm0, %v427_v23, 0.0  ;;  %s964_s28 = sshll.u32 %s1042_s16, 4  ;;  %s965_s28 = int_to_ptr.vmem [resolvable:$false] %s964_s28 }
  0x69   : > { %v475_v32 = vsel %vm300_vm0, %v471_v28, 0.0  ;;  %v472_v33 = vsel %vm300_vm0, %v470_v29, 0.0  ;;  %v514_v34 = vmul.f32 %v773_v30, %v295_v5  ;;  %v513_v35 = vmul.f32 %v772_v31, %v294_v0  ;;  %p962_p8 = pnand %p961_p5, %p1591_p6  ;;  %s966_s22 = scalar_lea.vmem %s965_s28, 256 }
  0x6a   : > { %305 = vadd.xlane.f32.xlu0 %v304_v15  ;;  %v557_v40 = vmul.f32 %v775_v36, %v295_v5  ;;  %v556_v41 = vmul.f32 %v774_v37, %v294_v0  ;;  %v597_v13 = vlaneseq  ;;  %p967_p13 = scmp.lt.s32.totalorder %s1514_s26, %s965_s28  ;;  %p968_p1 = scmp.lt.s32.totalorder %s966_s22, %s960_s17 }
  0x6b   : > { %v518_v38 = vsel %vm300_vm0, %v514_v34, 0.0  ;;  %v515_v39 = vsel %vm300_vm0, %v513_v35, 0.0  ;;  %p963_p12 = pneg %p962_p8 }
  0x6c   : > { %347 = vadd.xlane.f32.xlu1 %v346_v14  ;;  %v561_v42 = vsel %vm300_vm0, %v557_v40, 0.0  ;;  %v558_v43 = vsel %vm300_vm0, %v556_v41, 0.0  ;;  %v1302_v19 = vshrl.u32 %v597_v13, 7  ;;  %vm607_vm0 = vcmask 7168   ;;  %p969_p2 = por %p968_p1, %p967_p13 }
  0x6e   : > { %387 = vadd.xlane.f32.xlu0 %v386_v21  ;;  %v599_v24 = vadd.s32 8, %v1302_v19  ;;  %p970_p9 = pnand %p969_p2, %p963_p12 }
  0x70   : > { %390 = vadd.xlane.f32.xlu1 %v389_v20 }
  0x72   : > { %430 = vadd.xlane.f32.xlu0 %v429_v27  ;;  %v1314_v27 = vstv %s776_s23 }
  0x73   : > { %v1325_v35 = vadd.s32 %v1314_v27, %v599_v24 }
  0x74   : > { %433 = vadd.xlane.f32.xlu1 %v432_v26 }
  0x75   : > { %vm604_vm15 = vcmp.lt.s32.totalorder %v1325_v35, 20 }
  0x76   : > { %473 = vadd.xlane.f32.xlu0 %v472_v33 }
  0x78   : > { %476 = vadd.xlane.f32.xlu1 %v475_v32 }
  0x7a   : > { %516 = vadd.xlane.f32.xlu0 %v515_v39 }
  0x7c   : > { %519 = vadd.xlane.f32.xlu1 %v518_v38 }
  0x7e   : > { %559 = vadd.xlane.f32.xlu0 %v558_v43 }
  0x80   : > { %562 = vadd.xlane.f32.xlu1 %v561_v42 }
  0xf3   : > { %v1273_v45 = vpop.xlane.xlu0 %302 }
  0xf4   : > { %v307_v46 = vsub.f32 0.0, %v1273_v45 }
  0xf5   : > { %v1271_v44 = vpop.xlane.xlu1 %344 }
  0xf6   : > { %v311_v49 = vand.u32 2147483647, %v307_v46  ;;  %v351_v51 = vand.u32 2147483647, %v1271_v44  ;;  %v349_v32 = vmax.f32 %v1271_v44, 0.0  ;;  %v1329_v36 = vmax.f32 %v307_v46, 0.0 }
  0xf7   : > { %v1278_v48 = vpop.xlane.xlu0 %305 }
  0xf8   : > { %v308_v50 = vsub.f32 0.0, %v1278_v48  ;;  %v313_v54 = vsub.f32 0.0, %v311_v49  ;;  %v353_v55 = vsub.f32 0.0, %v351_v51 }
  0xf9   : > { %v1276_v47 = vpop.xlane.xlu1 %347 }
  0xfa   : > { %v312_v53 = vand.u32 2147483647, %v308_v50  ;;  %v352_v56 = vand.u32 2147483647, %v1276_v47  ;;  %v315_v60 = vmul.f32 1.442695, %v313_v54 }
  0xfb   : > { %v1287_v57 = vpop.xlane.xlu0 %387  ;;  %v355_v63 = vmul.f32 1.442695, %v353_v55  ;;  %v350_v37 = vmax.f32 %v1276_v47, 0.0  ;;  %v1332_v38 = vmax.f32 %v308_v50, 0.0 }
  0xfc   : > { %v314_v59 = vsub.f32 0.0, %v312_v53  ;;  %v394_v62 = vand.u32 2147483647, %v1287_v57  ;;  %v354_v0 = vsub.f32 0.0, %v352_v56  ;;  %848 = vpow2.f32 %v315_v60 }
  0xfd   : > { %v1284_v52 = vpop.xlane.xlu1 %390  ;;  %850 = vpow2.f32 %v355_v63  ;;  %v392_v43 = vmax.f32 %v1287_v57, 0.0 }
  0xfe   : > { %v395_v61 = vand.u32 2147483647, %v1284_v52  ;;  %v317_v3 = vmul.f32 1.442695, %v314_v59  ;;  %v396_v7 = vsub.f32 0.0, %v394_v62  ;;  %v393_v42 = vmax.f32 %v1284_v52, 0.0 }
  0xff   : > { %v1296_v5 = vpop.xlane.xlu0 %430  ;;  %v357_v8 = vmul.f32 1.442695, %v354_v0 }
 0x100   : > { %v397_v4 = vsub.f32 0.0, %v395_v61  ;;  %852 = vpow2.f32 %v317_v3  ;;  %v437_v10 = vand.u32 2147483647, %v1296_v5  ;;  %v398_v14 = vmul.f32 1.442695, %v396_v7 }
 0x101   : > { %v1289_v58 = vpop.xlane.xlu1 %433  ;;  %854 = vpow2.f32 %v357_v8  ;;  %v435_v49 = vmax.f32 %v1296_v5, 0.0 }
 0x102   : > { %v438_v1 = vand.u32 2147483647, %v1289_v58  ;;  %v400_v11 = vmul.f32 1.442695, %v397_v4  ;;  %v439_v16 = vsub.f32 0.0, %v437_v10  ;;  %v436_v48 = vmax.f32 %v1289_v58, 0.0 }
 0x103   : > { %v1300_v18 = vpop.xlane.xlu0 %473 }
 0x104   : > { %v440_v9 = vsub.f32 0.0, %v438_v1  ;;  %856 = vpow2.f32 %v400_v11  ;;  %v441_v21 = vmul.f32 1.442695, %v439_v16  ;;  %v480_v22 = vand.u32 2147483647, %v1300_v18 }
 0x105   : > { %v1294_v2 = vpop.xlane.xlu1 %476  ;;  %858 = vpow2.f32 %v398_v14  ;;  %v478_v3 = vmax.f32 %v1300_v18, 0.0  ;;  %v601_v18 = vadd.s32 %v1314_v27, %v1302_v19 }
 0x106   : > { %v481_v6 = vand.u32 2147483647, %v1294_v2  ;;  %v443_v15 = vmul.f32 1.442695, %v440_v9  ;;  %v1304_v20 = vpop.eup %848  ;;  %v482_v29 = vsub.f32 0.0, %v480_v22  ;;  %v479_v55 = vmax.f32 %v1294_v2, 0.0 }
 0x107   : > { %v1308_v23 = vpop.eup %850  ;;  %v319_v26 = vadd.f32 1.0, %v1304_v20  ;;  %v1334_v39 = vpop.xlane.xlu0 %516  ;;  %v322_v41 = vmul.f32 -0.5, %v1304_v20  ;;  %v325_v56 = vand.u32 2147483647, %v1304_v20 }
 0x108   : > { %v483_v12 = vsub.f32 0.0, %v481_v6  ;;  %860 = vpow2.f32 %v443_v15  ;;  %v359_v28 = vadd.f32 1.0, %v1308_v23  ;;  %v362_v33 = vmul.f32 -0.5, %v1308_v23 }
 0x109   : > { %v1317_v30 = vpop.xlane.xlu1 %519  ;;  %v484_v50 = vmul.f32 1.442695, %v482_v29  ;;  %v365_v63 = vand.u32 2147483647, %v1308_v23  ;;  %v323_v0 = vadd.f32 1.0, %v322_v41 }
 0x10a   : > { %v486_v17 = vmul.f32 1.442695, %v483_v12  ;;  %v1311_v25 = vpop.eup %852  ;;  %v363_v53 = vadd.f32 1.0, %v362_v33  ;;  %v524_v60 = vand.u32 2147483647, %v1317_v30  ;;  %v522_v33 = vmax.f32 %v1317_v30, 0.0 }
 0x10b   : > { %v1319_v31 = vpop.eup %854  ;;  %v328_v34 = vadd.f32 1.0, %v1311_v25  ;;  %v523_v7 = vand.u32 2147483647, %v1334_v39  ;;  %v1362_v8 = vpop.xlane.xlu0 %559  ;;  %vm1371_vm1 = vcmp.lt.f32.partialorder %v325_v56, 0.0004427343  ;;  %v331_v15 = vmul.f32 -0.5, %v1311_v25 }
 0x10c   : > { %862 = vpow2.f32 %v486_v17  ;;  %v368_v46 = vadd.f32 1.0, %v1319_v31  ;;  %v371_v54 = vmul.f32 -0.5, %v1319_v31  ;;  %v526_v6 = vsub.f32 0.0, %v524_v60 }
 0x10d   : > { %864 = vpow2.f32 %v441_v21  ;;  %v1353_v61 = vpop.xlane.xlu1 %562  ;;  %v1365_v9 = vmul.f32 %v1308_v23, %v363_v53  ;;  %v374_v11 = vand.u32 2147483647, %v1319_v31  ;;  %v525_v21 = vsub.f32 0.0, %v523_v7 }
 0x10e   : > { %866 = vlog2.f32 %v319_v26  ;;  %v1336_v40 = vpop.eup %856  ;;  %v372_v10 = vadd.f32 1.0, %v371_v54  ;;  %v567_v12 = vand.u32 2147483647, %v1353_v61  ;;  %v529_v17 = vmul.f32 1.442695, %v526_v6 }
 0x10f   : > { %v1342_v45 = vpop.eup %858  ;;  %868 = vlog2.f32 %v359_v28  ;;  %v411_v59 = vadd.f32 1.0, %v1336_v40  ;;  %v566_v23 = vand.u32 2147483647, %v1362_v8  ;;  %vm1378_vm2 = vcmp.lt.f32.partialorder %v365_v63, 0.0004427343 }
 0x110   : > { %870 = vlog2.f32 %v328_v34  ;;  %v402_v1 = vadd.f32 1.0, %v1342_v45  ;;  %v569_v22 = vsub.f32 0.0, %v567_v12  ;;  %v324_v28 = vmul.f32 %v1304_v20, %v323_v0 }
 0x111   : > { %872 = vpow2.f32 %v484_v50  ;;  %v414_v29 = vmul.f32 -0.5, %v1336_v40  ;;  %v527_v41 = vmul.f32 1.442695, %v525_v21  ;;  %v334_v53 = vand.u32 2147483647, %v1311_v25 }
 0x112   : > { %v1346_v51 = vpop.eup %860  ;;  %874 = vlog2.f32 %v368_v46  ;;  %v572_v46 = vmul.f32 1.442695, %v569_v22  ;;  %v405_v54 = vmul.f32 -0.5, %v1342_v45  ;;  %v568_v56 = vsub.f32 0.0, %v566_v23 }
 0x113   : > { %v454_v4 = vadd.f32 1.0, %v1346_v51  ;;  %876 = vlog2.f32 %v411_v59  ;;  %v332_v20 = vadd.f32 1.0, %v331_v15  ;;  %v417_v63 = vand.u32 2147483647, %v1336_v40 }
 0x114   : > { %878 = vlog2.f32 %v402_v1  ;;  %vm1391_vm3 = vcmp.lt.f32.partialorder %v374_v11, 0.0004427343  ;;  %v457_v6 = vmul.f32 -0.5, %v1346_v51  ;;  %v570_v7 = vmul.f32 1.442695, %v568_v56 }
 0x115   : > { %880 = vlog2.f32 %v454_v4  ;;  %v415_v4 = vadd.f32 1.0, %v414_v29  ;;  %v373_v21 = vmul.f32 %v1319_v31, %v372_v10  ;;  %v406_v22 = vadd.f32 1.0, %v405_v54 }
 0x116   : > { %v1355_v62 = vpop.eup %862  ;;  %882 = vpow2.f32 %v529_v17  ;;  %v408_v11 = vand.u32 2147483647, %v1342_v45  ;;  %vm1402_vm4 = vcmp.lt.f32.partialorder %v334_v53, 0.0004427343  ;;  %vm1409_vm5 = vcmp.lt.f32.partialorder %v417_v63, 0.0004427343 }
 0x117   : > { %v1369_v13 = vpop.eup %864  ;;  %v497_v16 = vadd.f32 1.0, %v1355_v62  ;;  %v458_v53 = vadd.f32 1.0, %v457_v6 }
 0x118   : > { %v867_v24 = vpop.eup %866  ;;  %v445_v34 = vadd.f32 1.0, %v1369_v13  ;;  %vm1418_vm6 = vcmp.lt.f32.partialorder %v408_v11, 0.0004427343 }
 0x119   : > { %v869_v50 = vpop.eup %868  ;;  %884 = vlog2.f32 %v497_v16  ;;  %v321_v60 = vmul.f32 0.6931472, %v867_v24  ;;  %v448_v16 = vmul.f32 -0.5, %v1369_v13 }
 0x11a   : > { %v871_v59 = vpop.eup %870  ;;  %886 = vpow2.f32 %v527_v41  ;;  %v361_v12 = vmul.f32 0.6931472, %v869_v50  ;;  %v416_v50 = vmul.f32 %v1336_v40, %v415_v4 }
 0x11b   : > { %v1389_v0 = vpop.eup %872  ;;  %888 = vpow2.f32 %v572_v46  ;;  %v327_v23 = vsel %vm1371_vm1, %v324_v28, %v321_v60  ;;  %v330_v24 = vmul.f32 0.6931472, %v871_v59  ;;  %v333_v46 = vmul.f32 %v1311_v25, %v332_v20 }
 0x11c   : > { %890 = vlog2.f32 %v445_v34  ;;  %v488_v15 = vadd.f32 1.0, %v1389_v0  ;;  %v875_v17 = vpop.eup %874  ;;  %v460_v34 = vand.u32 2147483647, %v1346_v51  ;;  %v367_v14 = vsel %vm1378_vm2, %v1365_v9, %v361_v12 }
 0x11d   : > { %892 = vpow2.f32 %v570_v7  ;;  %v877_v41 = vpop.eup %876  ;;  %v370_v28 = vmul.f32 0.6931472, %v875_v17  ;;  %v449_v54 = vadd.f32 1.0, %v448_v16  ;;  %v337_v59 = vadd.f32 %v327_v23, %v1329_v36 }
 0x11e   : > { %894 = vlog2.f32 %v488_v15  ;;  %v879_v10 = vpop.eup %878  ;;  %v407_v25 = vmul.f32 %v1342_v45, %v406_v22  ;;  %v451_v60 = vand.u32 2147483647, %v1369_v13  ;;  %v336_v26 = vsel %vm1402_vm4, %v333_v46, %v330_v24 }
 0x11f   : > { %v881_v56 = vpop.eup %880  ;;  %v413_v9 = vmul.f32 0.6931472, %v877_v41  ;;  %vm1427_vm7 = vcmp.lt.f32.partialorder %v460_v34, 0.0004427343  ;;  %v500_v36 = vmul.f32 -0.5, %v1355_v62  ;;  %v377_v45 = vadd.f32 %v367_v14, %v349_v32 }
 0x120   : > { %v1423_v20 = vpop.eup %882  ;;  %v404_v6 = vmul.f32 0.6931472, %v879_v10  ;;  %v503_v7 = vand.u32 2147483647, %v1355_v62  ;;  %v376_v15 = vsel %vm1391_vm3, %v373_v21, %v370_v28  ;;  %v456_v17 = vmul.f32 0.6931472, %v881_v56 }
 0x121   : > { %v540_v12 = vadd.f32 1.0, %v1423_v20  ;;  %v459_v22 = vmul.f32 %v1346_v51, %v458_v53  ;;  %v450_v11 = vmul.f32 %v1369_v13, %v449_v54  ;;  %v379_v24 = vadd.f32 %v377_v45, %v337_v59 }
 0x122   : > { %v338_v44 = vadd.f32 %v336_v26, %v1332_v38  ;;  %vm1445_vm8 = vcmp.lt.f32.partialorder %v451_v60, 0.0004427343  ;;  %v419_v1 = vsel %vm1409_vm5, %v416_v50, %v413_v9  ;;  %v501_v21 = vadd.f32 1.0, %v500_v36 }
 0x123   : > { %v885_v4 = vpop.eup %884  ;;  %896 = vlog2.f32 %v540_v12  ;;  %v491_v51 = vmul.f32 -0.5, %v1389_v0  ;;  %v378_v38 = vadd.f32 %v376_v15, %v350_v37  ;;  %v410_v46 = vsel %vm1418_vm6, %v407_v25, %v404_v6 }
 0x124   : > { %v1436_v16 = vpop.eup %886  ;;  %vm1460_vm9 = vcmp.lt.f32.partialorder %v503_v7, 0.0004427343  ;;  %v462_v50 = vsel %vm1427_vm7, %v459_v22, %v456_v17  ;;  %v499_v31 = vmul.f32 0.6931472, %v885_v4  ;;  %v543_v14 = vmul.f32 -0.5, %v1423_v20 }
 0x125   : > { %v1442_v23 = vpop.eup %888  ;;  %v531_v29 = vadd.f32 1.0, %v1436_v16  ;;  %v380_v53 = vadd.f32 %v378_v38, %v338_v44  ;;  %v421_v47 = vadd.f32 %v419_v1, %v393_v42  ;;  %v534_v37 = vmul.f32 -0.5, %v1436_v16 }
 0x126   : > { %v891_v34 = vpop.eup %890  ;;  %v583_v13 = vadd.f32 1.0, %v1442_v23  ;;  %v502_v59 = vmul.f32 %v1355_v62, %v501_v21  ;;  %v492_v25 = vadd.f32 1.0, %v491_v51  ;;  %v586_v40 = vmul.f32 -0.5, %v1442_v23 }
 0x127   : > { %v1454_v41 = vpop.eup %892  ;;  %898 = vlog2.f32 %v531_v29  ;;  %v447_v56 = vmul.f32 0.6931472, %v891_v34  ;;  %v420_v60 = vadd.f32 %v410_v46, %v392_v43  ;;  %v464_v26 = vadd.f32 %v462_v50, %v436_v48 }
 0x128   : > { %900 = vlog2.f32 %v583_v13  ;;  %v895_v28 = vpop.eup %894  ;;  %v574_v54 = vadd.f32 1.0, %v1454_v41  ;;  %v494_v9 = vand.u32 2147483647, %v1389_v0  ;;  %v505_v52 = vsel %vm1460_vm9, %v502_v59, %v499_v31 }
 0x129   : > { %v490_v42 = vmul.f32 0.6931472, %v895_v28  ;;  %v544_v63 = vadd.f32 1.0, %v543_v14  ;;  %v521_v36 = vmax.f32 %v1334_v39, 0.0  ;;  %v423_v62 = vadd.f32 %v421_v47, %v380_v53 }
 0x12a   : > { %902 = vlog2.f32 %v574_v54  ;;  %v546_v4 = vand.u32 2147483647, %v1423_v20  ;;  %v535_v45 = vadd.f32 1.0, %v534_v37  ;;  %v537_v57 = vand.u32 2147483647, %v1436_v16 }
 0x12b   : > { %v453_v58 = vsel %vm1445_vm8, %v450_v11, %v447_v56  ;;  %v493_v43 = vmul.f32 %v1389_v0, %v492_v25  ;;  %v587_v48 = vadd.f32 1.0, %v586_v40  ;;  %v577_v6 = vmul.f32 -0.5, %v1454_v41 }
 0x12c   : > { %v422_v12 = vadd.f32 %v420_v60, %v379_v24  ;;  %v466_v15 = vadd.f32 %v464_v26, %v423_v62  ;;  %v507_v39 = vadd.f32 %v505_v52, %v479_v55  ;;  %vm495_vm10 = vcmp.lt.f32.partialorder %v494_v9, 0.0004427343 }
 0x12d   : > { %v897_v7 = vpop.eup %896  ;;  %v496_v17 = vsel %vm495_vm10, %v493_v43, %v490_v42  ;;  %v545_v44 = vmul.f32 %v1423_v20, %v544_v63  ;;  %v589_v29 = vand.u32 2147483647, %v1442_v23  ;;  %v463_v0 = vadd.f32 %v453_v58, %v435_v49 }
 0x12e   : > { %v542_v22 = vmul.f32 0.6931472, %v897_v7  ;;  %vm547_vm11 = vcmp.lt.f32.partialorder %v546_v4, 0.0004427343  ;;  %v536_v11 = vmul.f32 %v1436_v16, %v535_v45  ;;  %vm1494_vm12 = vcmp.lt.f32.partialorder %v537_v57, 0.0004427343 }
 0x12f   : > { %v588_v1 = vmul.f32 %v1442_v23, %v587_v48  ;;  %v578_v21 = vadd.f32 1.0, %v577_v6  ;;  %v506_v20 = vadd.f32 %v496_v17, %v478_v3  ;;  %v580_v51 = vand.u32 2147483647, %v1454_v41 }
 0x130   : > { %v548_v55 = vsel %vm547_vm11, %v545_v44, %v542_v22  ;;  %v509_v16 = vadd.f32 %v507_v39, %v466_v15  ;;  %v565_v38 = vmax.f32 %v1353_v61, 0.0  ;;  %vm590_vm13 = vcmp.lt.f32.partialorder %v589_v29, 0.0004427343 }
 0x131   : > { %v899_v32 = vpop.eup %898  ;;  %v550_v5 = vadd.f32 %v548_v55, %v522_v33  ;;  %v465_v10 = vadd.f32 %v463_v0, %v422_v12  ;;  %v579_v31 = vmul.f32 %v1454_v41, %v578_v21  ;;  %v564_v28 = vmax.f32 %v1362_v8, 0.0 }
 0x132   : > { %v901_v2 = vpop.eup %900  ;;  %v533_v34 = vmul.f32 0.6931472, %v899_v32  ;;  %vm581_vm14 = vcmp.lt.f32.partialorder %v580_v51, 0.0004427343  ;;  %vm603_vm1 = vcmp.lt.s32.totalorder %v601_v18, 20 }
 0x133   : > { %v585_v49 = vmul.f32 0.6931472, %v901_v2  ;;  %v552_v3 = vadd.f32 %v550_v5, %v509_v16  ;;  %v508_v14 = vadd.f32 %v506_v20, %v465_v10 }
 0x134   : > { %v539_v13 = vsel %vm1494_vm12, %v536_v11, %v533_v34  ;;  %v903_v46 = vpop.eup %902 }
 0x135   : > { %v549_v23 = vadd.f32 %v539_v13, %v521_v36  ;;  %v591_v50 = vsel %vm590_vm13, %v588_v1, %v585_v49  ;;  %v576_v33 = vmul.f32 0.6931472, %v903_v46 }
 0x136   : > { %v593_v30 = vadd.f32 %v591_v50, %v565_v38 }
 0x137   : > { %v582_v53 = vsel %vm581_vm14, %v579_v31, %v576_v33  ;;  %v551_v47 = vadd.f32 %v549_v23, %v508_v14 }
 0x138   : > { %v595_v61 = vadd.f32 %v593_v30, %v552_v3  ;;  %v592_v37 = vadd.f32 %v582_v53, %v564_v28 }
 0x13a   : > { %v606_v54 = vsel %vm604_vm15, %v595_v61, 0.0  ;;  %v594_v19 = vadd.f32 %v592_v37, %v551_v47 }
 0x13b   : > { %v609_v27 = vsel %vm607_vm0, %v606_v54, 0.0 }
 0x13c   : > { %v605_v56 = vsel %vm603_vm1, %v594_v19, 0.0 }
 0x13d   : > { %v608_v59 = vsel %vm607_vm0, %v605_v56, 0.0 }
 0x13e   : > { %v610_v41 = vadd.f32 %v609_v27, %v608_v59 }
 0x140   : > { %611 = vadd.xlane.f32.xlu0 %v610_v41 }
 0x1cd   : > { %v612_v25 = vpop.xlane.xlu0 %611 }
 0x1ce   : > { %v613_v8 = vrot.slane %v612_v25, 4 }
 0x1d0   : > { %v614_v40 = vadd.f32 %v613_v8, %v612_v25 }
 0x1d2   : > { %v615_v35 = vrot.slane %v614_v40, 2 }
 0x1d4   : > { %v616_v60 = vadd.f32 %v615_v35, %v614_v40 }
 0x1d6   : > { %v617_v26 = vrot.slane %v616_v60, 1 }
 0x1d8   : > { %v618_v9 = vadd.f32 %v617_v26, %v616_v60 }
 0x1da   : > { %786 = vpush %v618_v9 }
 0x20b   : > { %s787_s27 = spop %786 }
 0x20c   : > { %v620_v52 = vstv %s787_s27 }
 0x20d   : > { %621 = vst [vmem:[%s290_s9] sm:$0xff] %v620_v52 }
 0x20e   : > { %973 = shalt.err (!%p970_p9)
}
 0x20f   : > { %s974_s6 = scalar_lea.hbm %s1519_s5, 128  ;;  %s978_s10 = scalar_lea.hbm %s1564_s3, 256 }
 0x210   : > { %p975_p10 = scmp.ne.s32.totalorder %s1519_s5, %s974_s6  ;;  %p979_p11 = scmp.lt.u32.totalorder %s1519_s5, %s1564_s3 }
 0x211   : > { %p980_p4 = scmp.lt.u32.totalorder %s978_s10, %s974_s6  ;;  %p982_p5 = scmp.lt.u32.totalorder %s974_s6, %s1519_s5 }
 0x212   : > { %p976_p0 = pnand %p975_p10, %p1591_p6 }
 0x213   : > { %p981_p7 = por %p980_p4, %p979_p11 }
 0x214   : > { %p977_p3 = pneg %p976_p0 }
 0x215   : > { %p983_p8 = por %p982_p5, %p981_p7 }
 0x217   : > { %p984_p12 = pnand %p983_p8, %p977_p3 }
 0x219   : > { %987 = shalt.err (!%p984_p12)
}
 0x21a   : > { %801 = dma.vmem_to_hbm [thread:$0]  (%p1591_p6), %s1514_s26, 128, %s1519_s5, %s623_s7  }
 0x21b PF: > { %s648_s8 = sand.u32 1, %s1018_s12   ;;  %p1592_p13 = scmp.ne.s32.totalorder %s1570_s25, 0 }
 0x21c   : > { %p1593_p1 = scmp.ge.s32.totalorder %s1030_s15, 2  ;;  %s649_s9 = scalar_lea.sflag [#allocation4], %s648_s8 }
 0x21e   : > { %p804_p2 = pnand %p1593_p1, %p1592_p13 }
 0x220   : > { %1013 = dma.done.wait (!%p804_p2), %s649_s9, 128  }
 0x221   : > { %1015 = vsyncadd (!%p804_p2), %s649_s9, 4294967168  ;;  %p19_p9 = scmp.ge.s32.totalorder %s1088_s18, 4   ;;  %s1594_s12 = smov %s1022_s13 }
 0x222   : > { %s1595_s13 = smov %s1026_s14  ;;  %s1596_s14 = smov %s1100_s21 }
 0x223   : > { %s1597_s15 = smov %s1088_s18  ;;  %21 = sbr.rel (!%p19_p9) target bundleno = 7 (0x7), region = 111 }
 0x22a   :  { %654 = vsyncpa [#allocation3], 1 }
 0x22b   :  { %656 = vsyncpa [#allocation3 + $0x1], 1 }
 0x22c   :  { %657 = vsyncpa [#allocation6], 1 }
 0x22d   :  { %659 = vsyncpa [#allocation6 + $0x1], 1 }
 0x22e   :  { %660 = vsyncpa [#allocation4], 1 }
 0x22f   :  { %662 = vsyncpa [#allocation4 + $0x1], 1 }

</bundles_post_ra>
